<compile_context>
chip_gen: v5e
topology: v5e:2x2
jax: 0.10.0
libtpu: 0.0.40
codegen_flags: <defaults>
</compile_context>

<pallas_src>
import functools

import jax
import jax.numpy as jnp
from jax.experimental import pallas as pl
from jax.experimental.pallas import tpu as pltpu

_PACK = 8  # batch rows packed per vreg row (sublane count)


def _ffnn_kernel(x_ref, w1_ref, b1_ref, rw2_ref, b2_ref, o_ref):
    # Layer 1 on the MXU: (tb8, 8D) @ (8D, 8H) block-diagonal -> per-sample
    # hidden vectors laid out 8-per-row, f32 accumulation.
    h = jnp.dot(x_ref[...], w1_ref[...], preferred_element_type=jnp.float32)
    # Bias + ReLU on the VPU (b1 is tiled to (1, 8H)).
    h = jnp.maximum(h + b1_ref[...], 0.0)
    # Layer 2: per-group reduction with w2 folded into a (8H, 8) matrix
    # -> (tb8, 8) logits; b2 scalar comes from SMEM.
    z = jnp.dot(h, rw2_ref[...], preferred_element_type=jnp.float32) + b2_ref[0, 0]
    # Exact sigmoid (EUP exp + exact divide); kernel is not EUP-bound.
    o_ref[...] = (1.0 / (1.0 + jnp.exp(-z))).astype(o_ref.dtype)


@functools.partial(jax.jit, static_argnames=("block_b8",))
def feed_forward_nn(x, w1, b1, w2, b2, *, block_b8=4096):
    """y = sigmoid(relu(x @ w1 + b1) @ w2 + b2).

    x: [B, D], w1: [D, H], b1: [1, H] or [H], w2: [H, 1], b2: [1, 1] -> [B, 1].
    (w1/w2 are the transposes of PyTorch's [out, in] Linear weights.)

    block_b8 = packed-row tile (8 samples per packed row); default 4096 rows
    = 32768 samples (~2 MiB of x) per grid step.
    """
    B, D = x.shape
    H = w1.shape[1]
    P = _PACK

    # ---- pack 8 batch rows per lane-row: [B, D] -> [B8_pad, 8*D] ----------
    B8 = pl.cdiv(B, P)                              # packed rows needed
    tb8 = min(block_b8, ((B8 + 7) // 8) * 8)        # sublane-aligned tile
    B8_pad = ((B8 + tb8 - 1) // tb8) * tb8
    rows_pad = B8_pad * P
    if rows_pad != B:
        x = jnp.pad(x, ((0, rows_pad - B), (0, 0)))
    x_packed = x.reshape(B8_pad, P * D)

    # ---- replicate params once at trace time (tiny: <=256 KiB) ------------
    eye = jnp.eye(P, dtype=w1.dtype)
    w1_big = jnp.kron(eye, w1)                      # (8D, 8H) block-diagonal
    b1_big = jnp.tile(b1.reshape(1, H), (1, P))     # (1, 8H)
    rw2 = jnp.kron(eye, w2.reshape(H, 1))           # (8H, 8) grouped reduce w/ w2
    b2_s = b2.reshape(1, 1)

    grid = (B8_pad // tb8,)

    flops = int(2 * B8_pad * (P * D) * (P * H) + 2 * B8_pad * (P * H) * P)
    bytes_accessed = int(
        4 * (B8_pad * P * D            # x (lane-dense)
             + (P * D) * (P * H)       # w1_big
             + P * H                   # b1_big
             + (P * H) * P             # rw2
             + 1                       # b2
             + B8_pad * P))            # output
    transcendentals = int(B8_pad * P)

    out = pl.pallas_call(
        _ffnn_kernel,
        out_shape=jax.ShapeDtypeStruct((B8_pad, P), jnp.float32),
        grid=grid,
        in_specs=[
            # x: lane-dense (tb8, 8D) tiles, auto double-buffered DMA.
            pl.BlockSpec((tb8, P * D), lambda i: (i, 0)),
            # Weights/biases: constant block index -> fetched once, VMEM-resident.
            pl.BlockSpec((P * D, P * H), lambda i: (0, 0)),
            pl.BlockSpec((1, P * H), lambda i: (0, 0)),
            pl.BlockSpec((P * H, P), lambda i: (0, 0)),
            # b2 is a single scalar: keep it in SMEM (no padded VMEM tile).
            pl.BlockSpec(memory_space=pltpu.MemorySpace.SMEM),
        ],
        out_specs=pl.BlockSpec((tb8, P), lambda i: (i, 0)),
        compiler_params=pltpu.CompilerParams(
            # Batch tiles are independent -> shard grid across TCs (v7x megacore).
            dimension_semantics=("parallel",),
            # Generous scoped VMEM: covers 2x lane-dense x buffers + the
            # (tb8, 8H) f32 intermediate on every generation (v5e default is
            # only 16 MiB); raise further when sweeping block_b8 upward.
            vmem_limit_bytes=32 * 1024 * 1024,
        ),
        cost_estimate=pl.CostEstimate(
            flops=flops,
            transcendentals=transcendentals,
            bytes_accessed=bytes_accessed,
        ),
    )(x_packed, w1_big, b1_big, rw2, b2_s)

    # (B8_pad, 8) rows hold samples 8r..8r+7 in order -> row-major reshape
    # restores the module's [B, 1] layout; drop batch padding.
    return out.reshape(rows_pad, 1)[:B]


def _ref(x, w1, b1, w2, b2):
    h = jnp.maximum(x @ w1 + b1, 0.0)
    return jax.nn.sigmoid(h @ w2 + b2)


if __name__ == "__main__":
    input_size = 16
    hidden_size = 32

    key = jax.random.PRNGKey(0)
    kx, kw1, kb1, kw2, kb2, kx2 = jax.random.split(key, 6)

    # Deterministic synthetic parameters (PyTorch-Linear-like uniform init).
    lim1 = 1.0 / jnp.sqrt(input_size)
    lim2 = 1.0 / jnp.sqrt(hidden_size)
    w1 = jax.random.uniform(kw1, (input_size, hidden_size), jnp.float32, -lim1, lim1)
    b1 = jax.random.uniform(kb1, (1, hidden_size), jnp.float32, -lim1, lim1)
    w2 = jax.random.uniform(kw2, (hidden_size, 1), jnp.float32, -lim2, lim2)
    b2 = jax.random.uniform(kb2, (1, 1), jnp.float32, -lim2, lim2)

    # Case 1: toy batch (single packed tile; batch padded 8 -> 64 rows).
    x_small = jax.random.normal(kx, (8, input_size), dtype=jnp.float32)
    out_small = jax.block_until_ready(feed_forward_nn(x_small, w1, b1, w2, b2))
    exp_small = _ref(x_small, w1, b1, w2, b2)
    assert out_small.shape == (8, 1), out_small.shape
    assert jnp.allclose(out_small, exp_small, atol=1e-5, rtol=1e-5)

    # Case 2: odd-sized multi-tile batch (small block_b8 to exercise the
    # multi-step grid + pipelining path while keeping the test tiny).
    x_big = jax.random.normal(kx2, (300, input_size), dtype=jnp.float32)
    out_big = jax.block_until_ready(
        feed_forward_nn(x_big, w1, b1, w2, b2, block_b8=16))
    exp_big = _ref(x_big, w1, b1, w2, b2)
    assert out_big.shape == (300, 1), out_big.shape
    assert jnp.allclose(out_big, exp_big, atol=1e-5, rtol=1e-5)

    print("KERNEL_OK")
</pallas_src>

<mosaic_0001>
module attributes {stable_mosaic.version = 11 : i64} {
  func.func @_ffnn_kernel(%arg0: i32, %arg1: memref<8x128xf32, #tpu.memory_space<vmem>>, %arg2: memref<128x256xf32, #tpu.memory_space<vmem>>, %arg3: memref<1x256xf32, #tpu.memory_space<vmem>>, %arg4: memref<256x8xf32, #tpu.memory_space<vmem>>, %arg5: memref<1x1xf32, #tpu.memory_space<smem>>, %arg6: memref<8x8xf32, #tpu.memory_space<vmem>>) attributes {dimension_semantics = [#tpu.dimension_semantics<parallel>], iteration_bounds = array<i64: 1>, scalar_prefetch = 0 : i64, scratch_operands = 0 : i64, tpu.core_type = #tpu.core_type<tc>, window_params = [{transform_indices = @transform_0, window_bounds = array<i64: 8, 128>}, {pipeline_mode = #tpu.pipeline_mode<synchronous>, transform_indices = @transform_1, window_bounds = array<i64: 128, 256>}, {pipeline_mode = #tpu.pipeline_mode<synchronous>, transform_indices = @transform_2, window_bounds = array<i64: 1, 256>}, {pipeline_mode = #tpu.pipeline_mode<synchronous>, transform_indices = @transform_3, window_bounds = array<i64: 256, 8>}, {transform_indices = @transform_4, window_bounds = array<i64: 1, 1>}, {transform_indices = @transform_5, window_bounds = array<i64: 8, 8>}]} {
    %c0 = arith.constant 0 : index
    %c0_0 = arith.constant 0 : index
    %0 = vector.load %arg1[%c0, %c0_0] : memref<8x128xf32, #tpu.memory_space<vmem>>, vector<8x128xf32>
    %c0_1 = arith.constant 0 : index
    %c0_2 = arith.constant 0 : index
    %1 = vector.load %arg2[%c0_1, %c0_2] : memref<128x256xf32, #tpu.memory_space<vmem>>, vector<128x256xf32>
    %cst = arith.constant dense<0.000000e+00> : vector<8x256xf32>
    %2 = tpu.matmul %0, %1, %cst {dimension_numbers = #tpu.dot_dimension_numbers<[1], [0], [0], [1], [0, 0, 1, 1], [], []>} : vector<8x128xf32>, vector<128x256xf32>, vector<8x256xf32> -> vector<8x256xf32>
    %c0_3 = arith.constant 0 : index
    %c0_4 = arith.constant 0 : index
    %3 = vector.load %arg3[%c0_3, %c0_4] : memref<1x256xf32, #tpu.memory_space<vmem>>, vector<1x256xf32>
    %4 = vector.broadcast %3 : vector<1x256xf32> to vector<8x256xf32>
    %5 = arith.addf %2, %4 : vector<8x256xf32>
    %cst_5 = arith.constant 0.000000e+00 : f32
    %6 = vector.broadcast %cst_5 : f32 to vector<8x256xf32>
    %7 = arith.maximumf %5, %6 : vector<8x256xf32>
    %c0_6 = arith.constant 0 : index
    %c0_7 = arith.constant 0 : index
    %8 = vector.load %arg4[%c0_6, %c0_7] : memref<256x8xf32, #tpu.memory_space<vmem>>, vector<256x8xf32>
    %cst_8 = arith.constant dense<0.000000e+00> : vector<8x8xf32>
    %9 = tpu.matmul %7, %8, %cst_8 {dimension_numbers = #tpu.dot_dimension_numbers<[1], [0], [0], [1], [0, 0, 1, 1], [], []>} : vector<8x256xf32>, vector<256x8xf32>, vector<8x8xf32> -> vector<8x8xf32>
    %c0_9 = arith.constant 0 : index
    %c0_10 = arith.constant 0 : index
    %10 = memref.load %arg5[%c0_9, %c0_10] : memref<1x1xf32, #tpu.memory_space<smem>>
    %11 = vector.broadcast %10 : f32 to vector<8x8xf32>
    %12 = arith.addf %9, %11 : vector<8x8xf32>
    %cst_11 = arith.constant 0.000000e+00 : f32
    %13 = vector.broadcast %cst_11 : f32 to vector<8x8xf32>
    %14 = arith.subf %13, %12 : vector<8x8xf32>
    %15 = math.exp %14 : vector<8x8xf32>
    %cst_12 = arith.constant 1.000000e+00 : f32
    %16 = vector.broadcast %cst_12 : f32 to vector<8x8xf32>
    %17 = arith.addf %16, %15 : vector<8x8xf32>
    %cst_13 = arith.constant 1.000000e+00 : f32
    %18 = vector.broadcast %cst_13 : f32 to vector<8x8xf32>
    %19 = arith.divf %18, %17 : vector<8x8xf32>
    %c0_14 = arith.constant 0 : index
    %c0_15 = arith.constant 0 : index
    %20 = vector.load %arg6[%c0_14, %c0_15] : memref<8x8xf32, #tpu.memory_space<vmem>>, vector<8x8xf32>
    tpu.vector_store %arg6[%c0_14, %c0_15], %19 {strides = array<i32>} : memref<8x8xf32, #tpu.memory_space<vmem>>, vector<8x8xf32>,
    return
  }
  func.func @transform_0(%arg0: i32) -> (i32, i32) {
    %c0_i32 = arith.constant 0 : i32
    %c0_i32_0 = arith.constant 0 : i32
    return %arg0, %c0_i32 : i32, i32
  }
  func.func @transform_1(%arg0: i32) -> (i32, i32) {
    %c0_i32 = arith.constant 0 : i32
    %c0_i32_0 = arith.constant 0 : i32
    %c0_i32_1 = arith.constant 0 : i32
    return %c0_i32, %c0_i32_0 : i32, i32
  }
  func.func @transform_2(%arg0: i32) -> (i32, i32) {
    %c0_i32 = arith.constant 0 : i32
    %c0_i32_0 = arith.constant 0 : i32
    %c0_i32_1 = arith.constant 0 : i32
    return %c0_i32, %c0_i32_0 : i32, i32
  }
  func.func @transform_3(%arg0: i32) -> (i32, i32) {
    %c0_i32 = arith.constant 0 : i32
    %c0_i32_0 = arith.constant 0 : i32
    %c0_i32_1 = arith.constant 0 : i32
    return %c0_i32, %c0_i32_0 : i32, i32
  }
  func.func @transform_4(%arg0: i32) -> (i32, i32) {
    %c0_i32 = arith.constant 0 : i32
    %c0_i32_0 = arith.constant 0 : i32
    %c0_i32_1 = arith.constant 0 : i32
    return %c0_i32, %c0_i32_0 : i32, i32
  }
  func.func @transform_5(%arg0: i32) -> (i32, i32) {
    %c0_i32 = arith.constant 0 : i32
    %c0_i32_0 = arith.constant 0 : i32
    return %arg0, %c0_i32 : i32, i32
  }
}

</mosaic_0001>

<bundles_post_ra>
// kernel: feed_forward_nn.1
= control target key start
LH: loop header
LB: loop body
LE: loop exit
PB: predicated region body
PF: predicated region fallthrough
CT: control target
= control target key end

     0   :  { %vm195_vm3 = vcmask 64512   ;;  %s439_s1 = inlined_call_operand.vmem [shape: f32[128,256], index: 1, kind: input, shape index: {}]   ;;  %s440_s3 = inlined_call_operand.vmem [shape: f32[256,8], index: 3, kind: input, shape index: {}]   ;;  %s441_s0 = inlined_call_operand.vmem [shape: f32[8,128], index: 0, kind: input, shape index: {}]   ;;  %s442_s2 = inlined_call_operand.vmem [shape: f32[1,256], index: 2, kind: input, shape index: {}]   ;;  %s443_s4 = inlined_call_operand.<no memory space> [shape: f32[1,1], index: 4, kind: input, shape index: {}]   ;;  %s444_s5 = inlined_call_operand.vmem [shape: f32[8,8], index: 5, kind: output, shape index: {}]  }
   0x1   :  { %v52_v0 = vld [vmem:[%s439_s1 + $0xf0] sm:$0xff]  ;;  %v50_v1 = vld [vmem:[%s439_s1 + $0xe0] sm:$0xff]  ;;  %v53_v2 = vld [vmem:[%s439_s1 + $0xf8] sm:$0xff] }
   0x2   :  { %60 = vmatpush.msra.mxu0 %v52_v0  ;;  %80 = vmatpush.msra.mxu1 %v53_v2  ;;  %v51_v3 = vld [vmem:[%s439_s1 + $0xe8] sm:$0xff]  ;;  %v48_v4 = vld [vmem:[%s439_s1 + $0xd0] sm:$0xff]  ;;  %v49_v5 = vld [vmem:[%s439_s1 + $0xd8] sm:$0xff] }
   0x3   :  { %v46_v6 = vld [vmem:[%s439_s1 + $0xc0] sm:$0xff]  ;;  %v47_v7 = vld [vmem:[%s439_s1 + $0xc8] sm:$0xff]  ;;  %v44_v8 = vld [vmem:[%s439_s1 + $0xb0] sm:$0xff] }
   0x4   :  { %61 = vmatpush.msra.mxu0 %v50_v1  ;;  %81 = vmatpush.msra.mxu1 %v51_v3  ;;  %v45_v9 = vld [vmem:[%s439_s1 + $0xb8] sm:$0xff]  ;;  %v42_v10 = vld [vmem:[%s439_s1 + $0xa0] sm:$0xff]  ;;  %v43_v11 = vld [vmem:[%s439_s1 + $0xa8] sm:$0xff] }
   0x5   :  { %v40_v12 = vld [vmem:[%s439_s1 + $0x90] sm:$0xff]  ;;  %v41_v13 = vld [vmem:[%s439_s1 + $0x98] sm:$0xff]  ;;  %v38_v17 = vld [vmem:[%s439_s1 + $0x80] sm:$0xff] }
   0x6   :  { %62 = vmatpush.msra.mxu0 %v48_v4  ;;  %82 = vmatpush.msra.mxu1 %v49_v5  ;;  %v117_v14 = vld [vmem:[%s440_s3 + $0x78] sm:$0xff]  ;;  %v116_v15 = vld [vmem:[%s440_s3 + $0x70] sm:$0xff]  ;;  %v39_v18 = vld [vmem:[%s439_s1 + $0x88] sm:$0xff] }
   0x7   :  { %v133_v16 = vld [vmem:[%s440_s3 + $0xf8] sm:$0xff]  ;;  %136 = vmatpush.msra.mxu2 %v117_v14  ;;  %v132_v19 = vld [vmem:[%s440_s3 + $0xf0] sm:$0xff]  ;;  %v115_v20 = vld [vmem:[%s440_s3 + $0x68] sm:$0xff] }
   0x8   :  { %63 = vmatpush.msra.mxu0 %v46_v6  ;;  %83 = vmatpush.msra.mxu1 %v47_v7  ;;  %v131_v21 = vld [vmem:[%s440_s3 + $0xe8] sm:$0xff]  ;;  %v36_v22 = vld [vmem:[%s439_s1 + $0x70] sm:$0xff]  ;;  %v37_v23 = vld [vmem:[%s439_s1 + $0x78] sm:$0xff] }
   0x9   :  { %156 = vmatpush.msra.mxu3 %v133_v16  ;;  %137 = vmatpush.msra.mxu2 %v116_v15  ;;  %v114_v24 = vld [vmem:[%s440_s3 + $0x60] sm:$0xff]  ;;  %v35_v27 = vld [vmem:[%s439_s1 + $0x68] sm:$0xff]  ;;  %v113_v28 = vld [vmem:[%s440_s3 + $0x58] sm:$0xff] }
   0xa   :  { %64 = vmatpush.msra.mxu0 %v44_v8  ;;  %84 = vmatpush.msra.mxu1 %v45_v9  ;;  %v130_v25 = vld [vmem:[%s440_s3 + $0xe0] sm:$0xff]  ;;  %v129_v29 = vld [vmem:[%s440_s3 + $0xd8] sm:$0xff]  ;;  %v32_v30 = vld [vmem:[%s439_s1 + $0x50] sm:$0xff] }
   0xb   :  { %157 = vmatpush.msra.mxu3 %v132_v19  ;;  %v34_v26 = vld [vmem:[%s439_s1 + $0x60] sm:$0xff]  ;;  %138 = vmatpush.msra.mxu2 %v115_v20  ;;  %v33_v31 = vld [vmem:[%s439_s1 + $0x58] sm:$0xff]  ;;  %v112_v32 = vld [vmem:[%s440_s3 + $0x50] sm:$0xff] }
   0xc   :  { %65 = vmatpush.msra.mxu0 %v42_v10  ;;  %85 = vmatpush.msra.mxu1 %v43_v11  ;;  %v128_v33 = vld [vmem:[%s440_s3 + $0xd0] sm:$0xff]  ;;  %v30_v34 = vld [vmem:[%s439_s1 + $0x40] sm:$0xff]  ;;  %v31_v35 = vld [vmem:[%s439_s1 + $0x48] sm:$0xff]  ;;  %v135_v10 = vstv %s443_s4 }
   0xd   :  { %158 = vmatpush.msra.mxu3 %v131_v21  ;;  %139 = vmatpush.msra.mxu2 %v114_v24  ;;  %v111_v36 = vld [vmem:[%s440_s3 + $0x48] sm:$0xff]  ;;  %v28_v38 = vld [vmem:[%s439_s1 + $0x30] sm:$0xff]  ;;  %v29_v39 = vld [vmem:[%s439_s1 + $0x38] sm:$0xff] }
   0xe   :  { %66 = vmatpush.msra.mxu0 %v40_v12  ;;  %86 = vmatpush.msra.mxu1 %v41_v13  ;;  %v127_v37 = vld [vmem:[%s440_s3 + $0xc8] sm:$0xff]  ;;  %v110_v40 = vld [vmem:[%s440_s3 + $0x40] sm:$0xff]  ;;  %v109_v44 = vld [vmem:[%s440_s3 + $0x38] sm:$0xff] }
   0xf   :  { %159 = vmatpush.msra.mxu3 %v130_v25  ;;  %140 = vmatpush.msra.mxu2 %v113_v28  ;;  %v126_v41 = vld [vmem:[%s440_s3 + $0xc0] sm:$0xff]  ;;  %v27_v43 = vld [vmem:[%s439_s1 + $0x28] sm:$0xff]  ;;  %v125_v45 = vld [vmem:[%s440_s3 + $0xb8] sm:$0xff] }
  0x10   :  { %67 = vmatpush.msra.mxu0 %v38_v17  ;;  %87 = vmatpush.msra.mxu1 %v39_v18  ;;  %v26_v42 = vld [vmem:[%s439_s1 + $0x20] sm:$0xff]  ;;  %v24_v46 = vld [vmem:[%s439_s1 + $0x10] sm:$0xff]  ;;  %v25_v47 = vld [vmem:[%s439_s1 + $0x18] sm:$0xff] }
  0x11   :  { %160 = vmatpush.msra.mxu3 %v129_v29  ;;  %141 = vmatpush.msra.mxu2 %v112_v32  ;;  %v108_v48 = vld [vmem:[%s440_s3 + $0x30] sm:$0xff]  ;;  %v22_v50 = vld [vmem:[%s439_s1] sm:$0xff]  ;;  %v23_v51 = vld [vmem:[%s439_s1 + $0x8] sm:$0xff] }
  0x12   :  { %68 = vmatpush.msra.mxu0 %v36_v22  ;;  %88 = vmatpush.msra.mxu1 %v37_v23  ;;  %v124_v49 = vld [vmem:[%s440_s3 + $0xb0] sm:$0xff]  ;;  %v21_v52 = vld [vmem:[%s441_s0] sm:$0xff]  ;;  %v107_v53 = vld [vmem:[%s440_s3 + $0x28] sm:$0xff] }
  0x13   :  { %161 = vmatpush.msra.mxu3 %v128_v33  ;;  %142 = vmatpush.msra.mxu2 %v111_v36  ;;  %v123_v54 = vld [vmem:[%s440_s3 + $0xa8] sm:$0xff]  ;;  %v106_v55 = vld [vmem:[%s440_s3 + $0x20] sm:$0xff]  ;;  %v105_v57 = vld [vmem:[%s440_s3 + $0x18] sm:$0xff] }
  0x14   :  { %69 = vmatpush.msra.mxu0 %v34_v26  ;;  %89 = vmatpush.msra.mxu1 %v35_v27  ;;  %v122_v56 = vld [vmem:[%s440_s3 + $0xa0] sm:$0xff]  ;;  %v104_v58 = vld [vmem:[%s440_s3 + $0x10] sm:$0xff]  ;;  %v121_v59 = vld [vmem:[%s440_s3 + $0x98] sm:$0xff] }
  0x15   :  { %162 = vmatpush.msra.mxu3 %v127_v37  ;;  %143 = vmatpush.msra.mxu2 %v110_v40  ;;  %v103_v60 = vld [vmem:[%s440_s3 + $0x8] sm:$0xff]  ;;  %v120_v61 = vld [vmem:[%s440_s3 + $0x90] sm:$0xff]  ;;  %v102_v62 = vld [vmem:[%s440_s3] sm:$0xff] }
  0x16   :  { %70 = vmatpush.msra.mxu0 %v32_v30  ;;  %90 = vmatpush.msra.mxu1 %v33_v31  ;;  %v119_v63 = vld [vmem:[%s440_s3 + $0x88] sm:$0xff]  ;;  %v118_v0 = vld [vmem:[%s440_s3 + $0x80] sm:$0xff] }
  0x17   :  { %163 = vmatpush.msra.mxu3 %v126_v41  ;;  %144 = vmatpush.msra.mxu2 %v109_v44  ;;  %v54_v1 = vld [vmem:[%s442_s2] sm:$0x3] }
  0x18   :  { %71 = vmatpush.msra.mxu0 %v30_v34  ;;  %91 = vmatpush.msra.mxu1 %v31_v35  ;;  %v56_v2 = vperm.slane %v54_v1, 0  ;;  %v57_v3 = vperm.slane %v54_v1, 1 }
  0x19   :  { %164 = vmatpush.msra.mxu3 %v125_v45  ;;  %145 = vmatpush.msra.mxu2 %v108_v48 }
  0x1a   :  { %72 = vmatpush.msra.mxu0 %v28_v38  ;;  %92 = vmatpush.msra.mxu1 %v29_v39 }
  0x1b   :  { %165 = vmatpush.msra.mxu3 %v124_v49  ;;  %146 = vmatpush.msra.mxu2 %v107_v53 }
  0x1c   :  { %73 = vmatpush.msra.mxu0 %v26_v42  ;;  %93 = vmatpush.msra.mxu1 %v27_v43 }
  0x1d   :  { %166 = vmatpush.msra.mxu3 %v123_v54  ;;  %147 = vmatpush.msra.mxu2 %v106_v55 }
  0x1e   :  { %74 = vmatpush.msra.mxu0 %v24_v46  ;;  %94 = vmatpush.msra.mxu1 %v25_v47 }
  0x1f   :  { %167 = vmatpush.msra.mxu3 %v122_v56  ;;  %148 = vmatpush.msra.mxu2 %v105_v57 }
  0x20   :  { %75 = vmatpush.msra.mxu0 %v22_v50  ;;  %95 = vmatpush.msra.mxu1 %v23_v51 }
  0x21   :  { %76 = vmatmul.f32.vlgmr.msra.gmra.mxu0 %v21_v52  ;;  %96 = vmatmul.f32.vlgmr.msra.gmra.mxu1 %v21_v52 }
  0x22   :  { %149 = vmatpush.msra.mxu2 %v104_v58  ;;  %168 = vmatpush.msra.mxu3 %v121_v59 }
  0x24   :  { %150 = vmatpush.msra.mxu2 %v103_v60  ;;  %169 = vmatpush.msra.mxu3 %v120_v61 }
  0x26   :  { %151 = vmatpush.msra.mxu2 %v102_v62  ;;  %170 = vmatpush.msra.mxu3 %v119_v63 }
  0x28   :  { %171 = vmatpush.msra.mxu3 %v118_v0 }
  0x9e   :  { %v77_v4 = vpop.f32.mrf.mxu0  ;;  %v97_v5 = vpop.f32.mrf.mxu1 }
  0x9f   :  { %v78_v6 = vadd.f32 %v77_v4, %v56_v2  ;;  %v98_v7 = vadd.f32 %v97_v5, %v57_v3 }
  0xa1   :  { %v100_v8 = vmax.f32 %v78_v6, 0.0  ;;  %v101_v9 = vmax.f32 %v98_v7, 0.0 }
  0xa3   :  { %152 = vmatmul.f32.vlgmr.msra.gmra.mxu2 %v100_v8  ;;  %172 = vmatmul.f32.vlgmr.msra.gmra.mxu3 %v101_v9 }
 0x126   :  { %v153_v11 = vpop.f32.mrf.mxu2  ;;  %v173_v12 = vpop.f32.mrf.mxu3 }
 0x127   :  { %v154_v13 = vadd.f32 %v153_v11, %v135_v10 }
 0x129   :  { %v174_v14 = vadd.f32 %v173_v12, %v154_v13 }
 0x12b   :  { %v176_v15 = vsub.f32 0.0, %v174_v14 }
 0x12d   :  { %v177_v16 = vmul.f32 1.442695, %v176_v15 }
 0x12f   :  { %201 = vpow2.f32 %v177_v16 }
 0x135   :  { %v202_v17 = vpop.eup %201 }
 0x136   :  { %v179_v18 = vadd.f32 1.0, %v202_v17 }
 0x138   :  { %203 = vrcp.f32 %v179_v18  ;;  %v191_v22 = vand.u32 2147483648, %v179_v18  ;;  %v189_v24 = vand.u32 2147483647, %v179_v18  ;;  %vm185_vm1 = vweird.f32 %v179_v18 }
 0x13a   :  { %v192_v26 = vor.u32 1.1754944e-38, %v191_v22  ;;  %vm190_vm4 = vcmp.eq.f32.partialorder %v189_v24, 8.507059e+37 }
 0x13e   :  { %v204_v19 = vpop.eup %203 }
 0x13f   :  { %v181_v20 = vmul.f32 %v204_v19, %v179_v18  ;;  %vm186_vm0 = vweird.f32 %v204_v19 }
 0x140   :  { %vm187_vm2 = vmor %vm185_vm1, %vm186_vm0 }
 0x141   :  { %v182_v21 = vsub.f32 1.0, %v181_v20 }
 0x143   :  { %v183_v23 = vmul.f32 %v204_v19, %v182_v21 }
 0x145   :  { %v184_v25 = vadd.f32 %v204_v19, %v183_v23 }
 0x147   :  { %v188_v27 = vsel %vm187_vm2, %v204_v19, %v184_v25 }
 0x148   :  { %v193_v28 = vsel %vm190_vm4, %v192_v26, %v188_v27 }
 0x149   :  { %196 = vst.msk [vmem:[%s444_s5] sm:$0xff] %vm195_vm3, %v193_v28 }

</bundles_post_ra>
